<compile_context>
chip_gen: v7x
topology: tpu7x:2x2x1
jax: 0.10.0
libtpu: 0.0.40
codegen_flags: <defaults>
</compile_context>

<pallas_src>
import functools

import jax
import jax.numpy as jnp
from jax.experimental import pallas as pl
from jax.experimental.pallas import tpu as pltpu

LANE = 128  # TPU vreg lane width


def _round_up(x, m):
    return ((x + m - 1) // m) * m


def _pad2d(a, rows, cols, dtype):
    """Zero-pad a 2-D array to (rows, cols) and cast (wrapper-side plumbing)."""
    out = jnp.zeros((rows, cols), dtype)
    return out.at[: a.shape[0], : a.shape[1]].set(a.astype(dtype))


def dqn_mlp_kernel(x_ref, w1_ref, b1_ref, w2_ref, b2_ref, w3_ref, b3_ref, o_ref):
    """Fused 3-layer MLP, one lane-dense batch tile per grid step.

    MXU operands keep the dtype the wrapper fed (bf16 by default, f32
    accumulation); bias-add and ReLU run in f32 on the VPU.
    """
    cdt = x_ref.dtype  # compute (MXU operand) dtype

    # Layer 1: Linear + ReLU
    h1 = jnp.dot(x_ref[...], w1_ref[...], preferred_element_type=jnp.float32)
    h1 = jnp.maximum(h1 + b1_ref[...], 0.0).astype(cdt)

    # Layer 2: Linear + ReLU
    h2 = jnp.dot(h1, w2_ref[...], preferred_element_type=jnp.float32)
    h2 = jnp.maximum(h2 + b2_ref[...], 0.0).astype(cdt)

    # Layer 3: Linear (Q-values, no activation)
    q = jnp.dot(h2, w3_ref[...], preferred_element_type=jnp.float32) + b3_ref[...]
    o_ref[...] = q.astype(o_ref.dtype)


@functools.partial(jax.jit, static_argnames=("batch_tile", "mxu_dtype"))
def dqn_forward(x, params, *, batch_tile=None, mxu_dtype=jnp.bfloat16):
    """Fused DQN MLP forward pass with a Pallas kernel.

    x:      [B, state_dim] float32
    params: dict with w1[in,H], b1[1,H], w2[H,H], b2[1,H], w3[H,A], b3[1,A]
    """
    B, in_dim = x.shape
    H = params["w1"].shape[1]
    A = params["w3"].shape[1]

    # Lane-dense padded feature dims.
    in_p = _round_up(in_dim, LANE)
    h_p = _round_up(H, LANE)
    a_p = _round_up(A, LANE)

    # Batch tile: sublane-packed (8 rows f32, 16 rows bf16).  Large batches get
    # 512-row tiles (near HBM roofline, >=2 grid steps for v7x megacore);
    # small batches run as a single padded tile.
    sub = 16 if mxu_dtype == jnp.bfloat16 else 8
    tb = min(512, _round_up(B, sub)) if batch_tile is None else batch_tile
    tb = _round_up(tb, sub)
    b_p = _round_up(B, tb)
    grid = (b_p // tb,)

    # One-time wrapper-side padding / casting.
    x_p = _pad2d(x, b_p, in_p, mxu_dtype)
    w1 = _pad2d(params["w1"], in_p, h_p, mxu_dtype)
    w2 = _pad2d(params["w2"], h_p, h_p, mxu_dtype)
    w3 = _pad2d(params["w3"], h_p, a_p, mxu_dtype)
    b1 = _pad2d(params["b1"], 1, h_p, jnp.float32)
    b2 = _pad2d(params["b2"], 1, h_p, jnp.float32)
    b3 = _pad2d(params["b3"], 1, a_p, jnp.float32)

    # Weights/biases are small: every grid step sees the full (constant) block.
    full = lambda shape: pl.BlockSpec(shape, lambda i: (0,) * len(shape))

    out = pl.pallas_call(
        dqn_mlp_kernel,
        out_shape=jax.ShapeDtypeStruct((b_p, a_p), x.dtype),
        grid_spec=pl.GridSpec(
            grid=grid,
            in_specs=[
                pl.BlockSpec((tb, in_p), lambda i: (i, 0)),  # x: tiled over batch
                full((in_p, h_p)),  # w1
                full((1, h_p)),     # b1
                full((h_p, h_p)),   # w2
                full((1, h_p)),     # b2
                full((h_p, a_p)),   # w3
                full((1, a_p)),     # b3
            ],
            out_specs=pl.BlockSpec((tb, a_p), lambda i: (i, 0)),
        ),
        compiler_params=pltpu.CompilerParams(
            dimension_semantics=("parallel",),
        ),
    )(x_p, w1, b1, w2, b2, w3, b3)

    # Strip batch / action padding.
    return out[:B, :A]


def init_params(key, in_dim, hidden, out_dim):
    """PyTorch-style (uniform +-1/sqrt(fan_in)) initialization."""
    ks = jax.random.split(key, 6)

    def linear(kw, kb, fan_in, fan_out):
        bound = 1.0 / (float(fan_in) ** 0.5)
        w = jax.random.uniform(kw, (fan_in, fan_out), jnp.float32, -bound, bound)
        b = jax.random.uniform(kb, (1, fan_out), jnp.float32, -bound, bound)
        return w, b

    w1, b1 = linear(ks[0], ks[1], in_dim, hidden)
    w2, b2 = linear(ks[2], ks[3], hidden, hidden)
    w3, b3 = linear(ks[4], ks[5], hidden, out_dim)
    return {"w1": w1, "b1": b1, "w2": w2, "b2": b2, "w3": w3, "b3": b3}


def reference_forward(x, p, mxu_dtype=jnp.bfloat16):
    """Pure-JAX reference mirroring the kernel's precision policy."""

    def lin(a, w, b):
        acc = jnp.dot(a.astype(mxu_dtype), w.astype(mxu_dtype),
                      preferred_element_type=jnp.float32)
        return acc + b.astype(jnp.float32)

    h1 = jnp.maximum(lin(x, p["w1"], p["b1"]), 0.0)
    h2 = jnp.maximum(lin(h1, p["w2"], p["b2"]), 0.0)
    return lin(h2, p["w3"], p["b3"]).astype(x.dtype)


if __name__ == "__main__":
    # TODO(synk): nn.Sequential accepts an arbitrary user-supplied layer list
    # and torch.load() of saved weights; only the canonical Linear/ReLU DQN MLP
    # forward pass is implemented here.
    key = jax.random.PRNGKey(0)
    k_x, k_p = jax.random.split(key)

    # Small DQN-style shapes: batch=8 states, state_dim=16, hidden=32, 4 actions.
    B, IN, H, A = 8, 16, 32, 4

    x = jax.random.normal(k_x, (B, IN), dtype=jnp.float32)
    params = init_params(k_p, IN, H, A)

    q = jax.block_until_ready(dqn_forward(x, params))
    assert q.shape == (B, A)

    # Matched-precision (bf16 MXU / f32 accum) reference: tight tolerance.
    q_ref = reference_forward(x, params)
    assert jnp.allclose(q, q_ref, atol=1e-2, rtol=1e-2), "mismatch vs bf16 reference"

    # Full-f32 reference: loose bf16 tolerance as a sanity check.
    q_f32 = reference_forward(x, params, mxu_dtype=jnp.float32)
    assert jnp.allclose(q, q_f32, atol=5e-2, rtol=5e-2), "mismatch vs f32 reference"

    print("KERNEL_OK")
</pallas_src>

<mosaic_0001>
module attributes {stable_mosaic.version = 11 : i64} {
  func.func @dqn_mlp_kernel(%arg0: i32, %arg1: memref<16x128xbf16, #tpu.memory_space<vmem>>, %arg2: memref<128x128xbf16, #tpu.memory_space<vmem>>, %arg3: memref<1x128xf32, #tpu.memory_space<vmem>>, %arg4: memref<128x128xbf16, #tpu.memory_space<vmem>>, %arg5: memref<1x128xf32, #tpu.memory_space<vmem>>, %arg6: memref<128x128xbf16, #tpu.memory_space<vmem>>, %arg7: memref<1x128xf32, #tpu.memory_space<vmem>>, %arg8: memref<16x128xf32, #tpu.memory_space<vmem>>) attributes {dimension_semantics = [#tpu.dimension_semantics<parallel>], iteration_bounds = array<i64: 1>, scalar_prefetch = 0 : i64, scratch_operands = 0 : i64, tpu.core_type = #tpu.core_type<tc>, window_params = [{transform_indices = @transform_0, window_bounds = array<i64: 16, 128>}, {pipeline_mode = #tpu.pipeline_mode<synchronous>, transform_indices = @transform_1, window_bounds = array<i64: 128, 128>}, {pipeline_mode = #tpu.pipeline_mode<synchronous>, transform_indices = @transform_2, window_bounds = array<i64: 1, 128>}, {pipeline_mode = #tpu.pipeline_mode<synchronous>, transform_indices = @transform_3, window_bounds = array<i64: 128, 128>}, {pipeline_mode = #tpu.pipeline_mode<synchronous>, transform_indices = @transform_4, window_bounds = array<i64: 1, 128>}, {pipeline_mode = #tpu.pipeline_mode<synchronous>, transform_indices = @transform_5, window_bounds = array<i64: 128, 128>}, {pipeline_mode = #tpu.pipeline_mode<synchronous>, transform_indices = @transform_6, window_bounds = array<i64: 1, 128>}, {transform_indices = @transform_7, window_bounds = array<i64: 16, 128>}]} {
    %c0 = arith.constant 0 : index
    %c0_0 = arith.constant 0 : index
    %0 = vector.load %arg1[%c0, %c0_0] : memref<16x128xbf16, #tpu.memory_space<vmem>>, vector<16x128xbf16>
    %c0_1 = arith.constant 0 : index
    %c0_2 = arith.constant 0 : index
    %1 = vector.load %arg2[%c0_1, %c0_2] : memref<128x128xbf16, #tpu.memory_space<vmem>>, vector<128x128xbf16>
    %cst = arith.constant dense<0.000000e+00> : vector<16x128xf32>
    %2 = tpu.matmul %0, %1, %cst {dimension_numbers = #tpu.dot_dimension_numbers<[1], [0], [0], [1], [0, 0, 1, 1], [], []>} : vector<16x128xbf16>, vector<128x128xbf16>, vector<16x128xf32> -> vector<16x128xf32>
    %c0_3 = arith.constant 0 : index
    %c0_4 = arith.constant 0 : index
    %3 = vector.load %arg3[%c0_3, %c0_4] : memref<1x128xf32, #tpu.memory_space<vmem>>, vector<1x128xf32>
    %4 = vector.broadcast %3 : vector<1x128xf32> to vector<16x128xf32>
    %5 = arith.addf %2, %4 : vector<16x128xf32>
    %cst_5 = arith.constant 0.000000e+00 : f32
    %6 = vector.broadcast %cst_5 : f32 to vector<16x128xf32>
    %7 = arith.maximumf %5, %6 : vector<16x128xf32>
    %8 = arith.truncf %7 : vector<16x128xf32> to vector<16x128xbf16>
    %c0_6 = arith.constant 0 : index
    %c0_7 = arith.constant 0 : index
    %9 = vector.load %arg4[%c0_6, %c0_7] : memref<128x128xbf16, #tpu.memory_space<vmem>>, vector<128x128xbf16>
    %cst_8 = arith.constant dense<0.000000e+00> : vector<16x128xf32>
    %10 = tpu.matmul %8, %9, %cst_8 {dimension_numbers = #tpu.dot_dimension_numbers<[1], [0], [0], [1], [0, 0, 1, 1], [], []>} : vector<16x128xbf16>, vector<128x128xbf16>, vector<16x128xf32> -> vector<16x128xf32>
    %c0_9 = arith.constant 0 : index
    %c0_10 = arith.constant 0 : index
    %11 = vector.load %arg5[%c0_9, %c0_10] : memref<1x128xf32, #tpu.memory_space<vmem>>, vector<1x128xf32>
    %12 = vector.broadcast %11 : vector<1x128xf32> to vector<16x128xf32>
    %13 = arith.addf %10, %12 : vector<16x128xf32>
    %cst_11 = arith.constant 0.000000e+00 : f32
    %14 = vector.broadcast %cst_11 : f32 to vector<16x128xf32>
    %15 = arith.maximumf %13, %14 : vector<16x128xf32>
    %16 = arith.truncf %15 : vector<16x128xf32> to vector<16x128xbf16>
    %c0_12 = arith.constant 0 : index
    %c0_13 = arith.constant 0 : index
    %17 = vector.load %arg6[%c0_12, %c0_13] : memref<128x128xbf16, #tpu.memory_space<vmem>>, vector<128x128xbf16>
    %cst_14 = arith.constant dense<0.000000e+00> : vector<16x128xf32>
    %18 = tpu.matmul %16, %17, %cst_14 {dimension_numbers = #tpu.dot_dimension_numbers<[1], [0], [0], [1], [0, 0, 1, 1], [], []>} : vector<16x128xbf16>, vector<128x128xbf16>, vector<16x128xf32> -> vector<16x128xf32>
    %c0_15 = arith.constant 0 : index
    %c0_16 = arith.constant 0 : index
    %19 = vector.load %arg7[%c0_15, %c0_16] : memref<1x128xf32, #tpu.memory_space<vmem>>, vector<1x128xf32>
    %20 = vector.broadcast %19 : vector<1x128xf32> to vector<16x128xf32>
    %21 = arith.addf %18, %20 : vector<16x128xf32>
    %c0_17 = arith.constant 0 : index
    %c0_18 = arith.constant 0 : index
    %22 = vector.load %arg8[%c0_17, %c0_18] : memref<16x128xf32, #tpu.memory_space<vmem>>, vector<16x128xf32>
    tpu.vector_store %arg8[%c0_17, %c0_18], %21 {strides = array<i32>} : memref<16x128xf32, #tpu.memory_space<vmem>>, vector<16x128xf32>,
    return
  }
  func.func @transform_0(%arg0: i32) -> (i32, i32) {
    %c0_i32 = arith.constant 0 : i32
    %c0_i32_0 = arith.constant 0 : i32
    return %arg0, %c0_i32 : i32, i32
  }
  func.func @transform_1(%arg0: i32) -> (i32, i32) {
    %c0_i32 = arith.constant 0 : i32
    %c0_i32_0 = arith.constant 0 : i32
    %c0_i32_1 = arith.constant 0 : i32
    return %c0_i32, %c0_i32_0 : i32, i32
  }
  func.func @transform_2(%arg0: i32) -> (i32, i32) {
    %c0_i32 = arith.constant 0 : i32
    %c0_i32_0 = arith.constant 0 : i32
    %c0_i32_1 = arith.constant 0 : i32
    return %c0_i32, %c0_i32_0 : i32, i32
  }
  func.func @transform_3(%arg0: i32) -> (i32, i32) {
    %c0_i32 = arith.constant 0 : i32
    %c0_i32_0 = arith.constant 0 : i32
    %c0_i32_1 = arith.constant 0 : i32
    return %c0_i32, %c0_i32_0 : i32, i32
  }
  func.func @transform_4(%arg0: i32) -> (i32, i32) {
    %c0_i32 = arith.constant 0 : i32
    %c0_i32_0 = arith.constant 0 : i32
    %c0_i32_1 = arith.constant 0 : i32
    return %c0_i32, %c0_i32_0 : i32, i32
  }
  func.func @transform_5(%arg0: i32) -> (i32, i32) {
    %c0_i32 = arith.constant 0 : i32
    %c0_i32_0 = arith.constant 0 : i32
    %c0_i32_1 = arith.constant 0 : i32
    return %c0_i32, %c0_i32_0 : i32, i32
  }
  func.func @transform_6(%arg0: i32) -> (i32, i32) {
    %c0_i32 = arith.constant 0 : i32
    %c0_i32_0 = arith.constant 0 : i32
    %c0_i32_1 = arith.constant 0 : i32
    return %c0_i32, %c0_i32_0 : i32, i32
  }
  func.func @transform_7(%arg0: i32) -> (i32, i32) {
    %c0_i32 = arith.constant 0 : i32
    %c0_i32_0 = arith.constant 0 : i32
    return %arg0, %c0_i32 : i32, i32
  }
}

</mosaic_0001>

<bundles_post_ra>
// kernel: dqn_forward.1
= control target key start
LH: loop header
LB: loop body
LE: loop exit
PB: predicated region body
PF: predicated region fallthrough
CT: control target
= control target key end

     0   :  { %v525_v0 = vmov 0.0   ;;  %vm526_vm0 = vmmov 0   ;;  %s687_s1 = inlined_call_operand.vmem [shape: bf16[128,128], index: 1, kind: input, shape index: {}]   ;;  %s688_s3 = inlined_call_operand.vmem [shape: bf16[128,128], index: 3, kind: input, shape index: {}]   ;;  %s689_s0 = inlined_call_operand.vmem [shape: bf16[16,128], index: 0, kind: input, shape index: {}]   ;;  %s690_s5 = inlined_call_operand.vmem [shape: bf16[128,128], index: 5, kind: input, shape index: {}]   ;;  %s691_s2 = inlined_call_operand.vmem [shape: f32[1,128], index: 2, kind: input, shape index: {}]   ;;  %s692_s4 = inlined_call_operand.vmem [shape: f32[1,128], index: 4, kind: input, shape index: {}]   ;;  %s693_s6 = inlined_call_operand.vmem [shape: f32[1,128], index: 6, kind: input, shape index: {}]   ;;  %s694_s7 = inlined_call_operand.vmem [shape: f32[16,128], index: 7, kind: output, shape index: {}]  }
   0x1   :  { %438 = vmatprep.subr.bf16.mxu0 %v525_v0  ;;  %v500_v1 = vld [vmem:[%s687_s1] sm:$0xff]   ;;  %454 = vmatprep.mubr.msk.bf16.mxu0 %vm526_vm0, %v525_v0  ;;  %v501_v2 = vld [vmem:[%s687_s1 + $0x8] sm:$0xff]   ;;  %v502_v3 = vld [vmem:[%s687_s1 + $0x10] sm:$0xff]  }
   0x2   :  { %458 = vmatprep.subr.bf16.mxu1 %v525_v0  ;;  %474 = vmatprep.mubr.msk.bf16.mxu1 %vm526_vm0, %v525_v0  ;;  %v509_v4 = vld [vmem:[%s688_s3] sm:$0xff]   ;;  %v503_v5 = vld [vmem:[%s687_s1 + $0x18] sm:$0xff]   ;;  %v510_v6 = vld [vmem:[%s688_s3 + $0x8] sm:$0xff]  }
   0x3   :  { %439 = vmatpush3.bf16.msra.mxu0 %v500_v1  ;;  %459 = vmatpush3.bf16.msra.mxu1 %v509_v4  ;;  %v504_v7 = vld [vmem:[%s687_s1 + $0x20] sm:$0xff]   ;;  %v511_v8 = vld [vmem:[%s688_s3 + $0x10] sm:$0xff]   ;;  %v505_v9 = vld [vmem:[%s687_s1 + $0x28] sm:$0xff]  }
   0x4   :  { %440 = vmatprep.subr.bf16.mxu0 %v525_v0  ;;  %460 = vmatprep.subr.bf16.mxu1 %v525_v0  ;;  %v512_v10 = vld [vmem:[%s688_s3 + $0x18] sm:$0xff]   ;;  %v506_v11 = vld [vmem:[%s687_s1 + $0x30] sm:$0xff]   ;;  %v513_v12 = vld [vmem:[%s688_s3 + $0x20] sm:$0xff]  }
   0x5   :  { %v507_v13 = vld [vmem:[%s687_s1 + $0x38] sm:$0xff]   ;;  %v514_v14 = vld [vmem:[%s688_s3 + $0x28] sm:$0xff]   ;;  %v508_v15 = vld [vmem:[%s689_s0] sm:$0xff]  }
   0x6   :  { %v515_v16 = vld [vmem:[%s688_s3 + $0x30] sm:$0xff]   ;;  %v516_v17 = vld [vmem:[%s688_s3 + $0x38] sm:$0xff]   ;;  %v517_v18 = vld [vmem:[%s690_s5] sm:$0xff]  }
   0x7   :  { %441 = vmatpush3.bf16.msra.mxu0 %v501_v2  ;;  %461 = vmatpush3.bf16.msra.mxu1 %v510_v6  ;;  %v518_v19 = vld [vmem:[%s690_s5 + $0x8] sm:$0xff]   ;;  %v519_v20 = vld [vmem:[%s690_s5 + $0x10] sm:$0xff]   ;;  %v520_v21 = vld [vmem:[%s690_s5 + $0x18] sm:$0xff]  }
   0x8   :  { %442 = vmatprep.subr.bf16.mxu0 %v525_v0  ;;  %462 = vmatprep.subr.bf16.mxu1 %v525_v0  ;;  %v521_v22 = vld [vmem:[%s690_s5 + $0x20] sm:$0xff]   ;;  %v522_v23 = vld [vmem:[%s690_s5 + $0x28] sm:$0xff]   ;;  %v523_v34 = vld [vmem:[%s690_s5 + $0x30] sm:$0xff]  }
   0x9   :  { %v383_v24 = vld [vmem:[%s691_s2] ss:$0 sm:$0xff]  ;;  %v524_v35 = vld [vmem:[%s690_s5 + $0x38] sm:$0xff]  }
   0xa   :  { %v393_v36 = vld [vmem:[%s692_s4] ss:$0 sm:$0xff] }
   0xb   :  { %443 = vmatpush3.bf16.msra.mxu0 %v502_v3  ;;  %463 = vmatpush3.bf16.msra.mxu1 %v511_v8  ;;  %v402_v46 = vld [vmem:[%s693_s6] ss:$0 sm:$0xff] }
   0xc   :  { %444 = vmatprep.subr.bf16.mxu0 %v525_v0  ;;  %464 = vmatprep.subr.bf16.mxu1 %v525_v0 }
   0xf   :  { %445 = vmatpush3.bf16.msra.mxu0 %v503_v5  ;;  %465 = vmatpush3.bf16.msra.mxu1 %v512_v10 }
  0x10   :  { %446 = vmatprep.subr.bf16.mxu0 %v525_v0  ;;  %466 = vmatprep.subr.bf16.mxu1 %v525_v0 }
  0x13   :  { %447 = vmatpush3.bf16.msra.mxu0 %v504_v7  ;;  %467 = vmatpush3.bf16.msra.mxu1 %v513_v12 }
  0x14   :  { %448 = vmatprep.subr.bf16.mxu0 %v525_v0  ;;  %468 = vmatprep.subr.bf16.mxu1 %v525_v0 }
  0x17   :  { %449 = vmatpush3.bf16.msra.mxu0 %v505_v9  ;;  %469 = vmatpush3.bf16.msra.mxu1 %v514_v14 }
  0x18   :  { %450 = vmatprep.subr.bf16.mxu0 %v525_v0  ;;  %470 = vmatprep.subr.bf16.mxu1 %v525_v0 }
  0x1b   :  { %451 = vmatpush3.bf16.msra.mxu0 %v506_v11  ;;  %471 = vmatpush3.bf16.msra.mxu1 %v515_v16 }
  0x1c   :  { %452 = vmatprep.subr.bf16.mxu0 %v525_v0  ;;  %472 = vmatprep.subr.bf16.mxu1 %v525_v0 }
  0x1f   :  { %453 = vmatpush3.bf16.msra.mxu0 %v507_v13  ;;  %473 = vmatpush3.bf16.msra.mxu1 %v516_v17 }
  0x20   :  { %478 = vmatprep.subr.bf16.mxu0 %v525_v0 }
  0x22   :  { %455 = vmatmul.mubr.bf16.vlgmr.msra.gmra.mrb[0].mxu0 %v508_v15 }
  0x23   :  { %494 = vmatprep.mubr.msk.bf16.mxu0 %vm526_vm0, %v525_v0  ;;  %479 = vmatpush3.bf16.msra.mxu0 %v517_v18 }
  0x24   :  { %480 = vmatprep.subr.bf16.mxu0 %v525_v0 }
  0x27   :  { %481 = vmatpush3.bf16.msra.mxu0 %v518_v19 }
  0x28   :  { %482 = vmatprep.subr.bf16.mxu0 %v525_v0 }
  0x2b   :  { %483 = vmatpush3.bf16.msra.mxu0 %v519_v20 }
  0x2c   :  { %484 = vmatprep.subr.bf16.mxu0 %v525_v0 }
  0x2f   :  { %485 = vmatpush3.bf16.msra.mxu0 %v520_v21 }
  0x30   :  { %486 = vmatprep.subr.bf16.mxu0 %v525_v0 }
  0x33   :  { %487 = vmatpush3.bf16.msra.mxu0 %v521_v22 }
  0x34   :  { %488 = vmatprep.subr.bf16.mxu0 %v525_v0 }
  0x37   :  { %489 = vmatpush3.bf16.msra.mxu0 %v522_v23 }
  0x38   :  { %490 = vmatprep.subr.bf16.mxu0 %v525_v0 }
  0x3b   :  { %491 = vmatpush3.bf16.msra.mxu0 %v523_v34 }
  0x3c   :  { %492 = vmatprep.subr.bf16.mxu0 %v525_v0 }
  0x3f   :  { %493 = vmatpush3.bf16.msra.mxu0 %v524_v35 }
  0xf5   :  { %v140_v25 = vpop.f32.mrb[0].mxu0 }
  0xf6   :  { %v141_v26 = vadd.f32 %v383_v24, %v140_v25  ;;  %v456_v27 = vpop.f32.mrb[1].mxu0 }
  0xf7   :  { %v143_v28 = vpop.f32.mrb[2].mxu0 }
  0xf8   :  { %v144_v29 = vadd.f32 %v383_v24, %v143_v28  ;;  %v457_v30 = vpop.f32.mrb[3].mxu0  ;;  %v147_v31 = vmax.f32 %v141_v26, 0.0 }
  0xfa   :  { %v148_v32 = vmax.f32 %v144_v29, 0.0 }
  0xfc   :  { %v149_v33 = vpack.c.bf16 %v148_v32, %v147_v31 }
  0xfe   :  { %475 = vmatmul.mubr.bf16.vlgmr.msra.gmra.mrb[0].mxu1 %v149_v33 }
 0x1d1   :  { %v255_v37 = vpop.f32.mrb[0].mxu1 }
 0x1d2   :  { %v256_v38 = vadd.f32 %v393_v36, %v255_v37  ;;  %v476_v39 = vpop.f32.mrb[1].mxu1 }
 0x1d3   :  { %v258_v40 = vpop.f32.mrb[2].mxu1 }
 0x1d4   :  { %v259_v41 = vadd.f32 %v393_v36, %v258_v40  ;;  %v477_v42 = vpop.f32.mrb[3].mxu1  ;;  %v262_v43 = vmax.f32 %v256_v38, 0.0 }
 0x1d6   :  { %v263_v44 = vmax.f32 %v259_v41, 0.0 }
 0x1d8   :  { %v264_v45 = vpack.c.bf16 %v263_v44, %v262_v43 }
 0x1da   :  { %495 = vmatmul.mubr.bf16.vlgmr.msra.gmra.mrb[4].mxu0 %v264_v45 }
 0x2ad   :  { %v370_v47 = vpop.f32.mrb[4].mxu0 }
 0x2ae   :  { %v371_v48 = vadd.f32 %v402_v46, %v370_v47  ;;  %v496_v49 = vpop.f32.mrb[5].mxu0 }
 0x2af   :  { %v373_v50 = vpop.f32.mrb[6].mxu0 }
 0x2b0   :  { %377 = vst [vmem:[%s694_s7] sm:$0xff] %v371_v48  ;;  %v374_v51 = vadd.f32 %v402_v46, %v373_v50  ;;  %v497_v52 = vpop.f32.mrb[7].mxu0 }
 0x2b2   :  { %378 = vst [vmem:[%s694_s7 + $0x8] sm:$0xff] %v374_v51 }

</bundles_post_ra>
